<compile_context>
chip_gen: v6e
topology: v6e:2x2x1
jax: 0.10.0
libtpu: 0.0.40
codegen_flags: <defaults>
</compile_context>

<pallas_src>
import functools
import math

import jax
import jax.numpy as jnp
import numpy as np
from jax import lax
from jax.experimental import pallas as pl
from jax.experimental.pallas import tpu as pltpu

EPS = 1e-5   # nn.BatchNorm1d default eps
LANES = 128


def _round_up(x, m):
    return (x + m - 1) // m * m


def convnet_kernel(x_ref, *refs, num_layers, compute_dtype):
    """refs = [ (w_cat, gamma, beta) * num_layers, fc_w, fc_b, out_ref ]."""
    out_ref = refs[-1]
    fc_w_ref = refs[-3]
    fc_b_ref = refs[-2]
    layer_refs = refs[:-3]

    h = x_ref[0].astype(jnp.float32)                               # [L, C_in]
    L = h.shape[0]

    for li in range(num_layers):
        w_ref, g_ref, beta_ref = layer_refs[3 * li: 3 * li + 3]
        c_in = h.shape[1]

        # --- Conv1d (k=3, stride=1, padding=1) as one K-concatenated MXU matmul ---
        zero_row = jnp.zeros((1, c_in), jnp.float32)
        hp = jnp.concatenate([zero_row, h, zero_row], axis=0)      # [L+2, C_in] zero-padded
        h_cat = jnp.concatenate(
            [hp[0:L], hp[1:L + 1], hp[2:L + 2]], axis=1)           # [L, 3*C_in]
        y = jnp.dot(h_cat.astype(compute_dtype), w_ref[...],
                    preferred_element_type=jnp.float32)            # [L, C_out], f32 acc
        # NOTE: conv bias intentionally omitted — it cancels exactly under the
        # train-mode BatchNorm mean subtraction below.

        # --- BatchNorm1d over the L ("batch") axis, train-mode batch statistics ---
        # TODO(synk): running_mean/running_var updates are a training-time side effect
        # only; they do not affect this forward output and are not materialized.
        mean = jnp.mean(y, axis=0, keepdims=True)                  # [1, C_out]
        d = y - mean
        var = jnp.mean(d * d, axis=0, keepdims=True)               # biased, like PyTorch
        scale = g_ref[...] * lax.rsqrt(var + EPS)                  # [1, C_out]

        # --- folded BN affine + ReLU (single [L, C] traversal) ---
        h = jnp.maximum(d * scale + beta_ref[...], 0.0)

    # --- Final Linear (output channel dim is lane-padded to 128 by the wrapper) ---
    out = jnp.dot(h.astype(compute_dtype), fc_w_ref[...],
                  preferred_element_type=jnp.float32) + fc_b_ref[...]
    out_ref[0] = out.astype(out_ref.dtype)


def convnet_forward(x, layers, fc_w, fc_b, *, compute_dtype=jnp.bfloat16):
    """x: [B, L, dim_in] batch of independent sequences (or a single [L, dim_in]).

    layers: list of (w[3, Cin, Cout], b[1, Cout], gamma[1, Cout], beta[1, Cout]).
    The conv bias b is accepted for parity with the PyTorch module but is NOT fed to
    the kernel (it cancels exactly under the following train-mode BatchNorm).
    """
    squeeze = (x.ndim == 2)
    if squeeze:
        x = x[None]
    B, L, dim_in = x.shape
    dim_out = fc_w.shape[1]
    padded_out = _round_up(dim_out, LANES)          # lane-dense final store

    # Host-side weight prep: concat conv taps along K, cast MXU operands, pad fc lanes.
    inputs = [x.astype(jnp.float32)]
    layer_shapes = []
    for (w, _b, g, be) in layers:
        k, c_in, c_out = w.shape
        w_cat = jnp.reshape(w, (k * c_in, c_out)).astype(compute_dtype)
        g = g.astype(jnp.float32)
        be = be.astype(jnp.float32)
        inputs += [w_cat, g, be]
        layer_shapes.append((w_cat.shape, g.shape, be.shape))
    fc_w_p = jnp.pad(fc_w, ((0, 0), (0, padded_out - dim_out))).astype(compute_dtype)
    fc_b_p = jnp.pad(fc_b, ((0, 0), (0, padded_out - dim_out))).astype(jnp.float32)
    inputs += [fc_w_p, fc_b_p]

    const_map = lambda b: (0, 0)                    # weights stay resident across grid steps
    in_specs = [pl.BlockSpec((1, L, dim_in), lambda b: (b, 0, 0))]
    for (w_shape, g_shape, be_shape) in layer_shapes:
        in_specs += [pl.BlockSpec(w_shape, const_map),
                     pl.BlockSpec(g_shape, const_map),
                     pl.BlockSpec(be_shape, const_map)]
    in_specs += [pl.BlockSpec(fc_w_p.shape, const_map),
                 pl.BlockSpec(fc_b_p.shape, const_map)]
    out_specs = pl.BlockSpec((1, L, padded_out), lambda b: (b, 0, 0))

    # Explicit scoped-VMEM budget: resident weights + double-buffered x/out blocks
    # + in-kernel f32 temporaries, with generous headroom (floor 32 MiB, cap 64 MiB).
    def nbytes(a):
        return int(a.size) * a.dtype.itemsize
    weight_bytes = sum(nbytes(a) for a in inputs[1:])
    io_bytes = 2 * (L * dim_in * 4 + L * padded_out * 4)
    max_c = max([dim_in] + [w.shape[2] for (w, _b, _g, _be) in layers])
    tmp_bytes = 8 * L * max(3 * max_c, padded_out) * 4
    vmem_limit = int(min(max(2 * (weight_bytes + io_bytes + tmp_bytes), 32 << 20), 64 << 20))

    kernel = functools.partial(convnet_kernel, num_layers=len(layers),
                               compute_dtype=compute_dtype)
    out = pl.pallas_call(
        kernel,
        out_shape=jax.ShapeDtypeStruct((B, L, padded_out), jnp.float32),
        grid_spec=pltpu.PrefetchScalarGridSpec(
            num_scalar_prefetch=0,
            grid=(B,),
            in_specs=in_specs,
            out_specs=out_specs,
        ),
        compiler_params=pltpu.CompilerParams(
            dimension_semantics=("parallel",),      # batch axis -> both TCs on v7x
            vmem_limit_bytes=vmem_limit,
        ),
    )(*inputs)

    out = out[:, :, :dim_out]
    if squeeze:
        out = out[0]
    return out


def reference_forward(x, layers, fc_w, fc_b, compute_dtype=jnp.float32):
    """Pure-JAX reference for one sequence x: [L, dim_in].

    compute_dtype=float32 reproduces the PyTorch module exactly (incl. conv bias);
    compute_dtype=bfloat16 mirrors the kernel's reduced-precision MXU operands
    (f32 accumulation, f32 BatchNorm) for a tight check of that path.
    """
    h = x.astype(jnp.float32)
    L = h.shape[0]
    for (w, b, g, be) in layers:
        hp = jnp.pad(h, ((1, 1), (0, 0)))
        y = jnp.asarray(b, jnp.float32)
        for k in range(3):
            y = y + jnp.dot(hp[k:k + L].astype(compute_dtype),
                            w[k].astype(compute_dtype),
                            preferred_element_type=jnp.float32)
        mean = y.mean(axis=0, keepdims=True)
        var = jnp.square(y - mean).mean(axis=0, keepdims=True)
        y = (y - mean) / jnp.sqrt(var + EPS) * g + be
        h = jnp.maximum(y, 0.0)
    return jnp.dot(h.astype(compute_dtype), fc_w.astype(compute_dtype),
                   preferred_element_type=jnp.float32) + fc_b


def init_params(key, dim_in, dim_out, layer_dims, kernel_size=3):
    """PyTorch-style (uniform fan-in) init.  Conv weights stored as [K, C_in, C_out]."""
    layers = []
    c_in = dim_in
    for c_out in layer_dims:
        key, k1, k2 = jax.random.split(key, 3)
        bound = 1.0 / math.sqrt(c_in * kernel_size)
        w = jax.random.uniform(k1, (kernel_size, c_in, c_out), jnp.float32, -bound, bound)
        b = jax.random.uniform(k2, (1, c_out), jnp.float32, -bound, bound)
        gamma = jnp.ones((1, c_out), jnp.float32)    # BatchNorm1d default weight
        beta = jnp.zeros((1, c_out), jnp.float32)    # BatchNorm1d default bias
        layers.append((w, b, gamma, beta))
        c_in = c_out
    key, k1, k2 = jax.random.split(key, 3)
    bound = 1.0 / math.sqrt(c_in)
    fc_w = jax.random.uniform(k1, (c_in, dim_out), jnp.float32, -bound, bound)
    fc_b = jax.random.uniform(k2, (1, dim_out), jnp.float32, -bound, bound)
    return key, layers, fc_w, fc_b


if __name__ == "__main__":
    # Small shapes consistent with the module structure (batch of independent sequences).
    B = 4            # independent sequences, amortizes launch/DMA overhead over a grid
    L = 16           # sequence / "batch" length (the 2-D input's leading dim)
    dim_in = 8
    dim_out = 8
    layer_dims = [32, 32, 16, 16]   # scaled-down version of the default [512,256,128,64]

    key = jax.random.PRNGKey(0)
    key, layers, fc_w, fc_b = init_params(key, dim_in, dim_out, layer_dims)

    key, kx = jax.random.split(key)
    x = jax.random.normal(kx, (B, L, dim_in), jnp.float32)

    # 1) f32 MXU-operand path: checked against the exact PyTorch-semantics reference.
    out_f32 = jax.block_until_ready(
        convnet_forward(x, layers, fc_w, fc_b, compute_dtype=jnp.float32))
    ref_f32 = jnp.stack([reference_forward(x[b], layers, fc_w, fc_b,
                                           compute_dtype=jnp.float32) for b in range(B)])
    np.testing.assert_allclose(np.asarray(out_f32), np.asarray(ref_f32),
                               atol=2e-2, rtol=2e-2)

    # 2) bf16 MXU-operand path (perf-recommended for v6e/v7x), checked against a
    #    matching reduced-precision reference.
    out_bf16 = jax.block_until_ready(
        convnet_forward(x, layers, fc_w, fc_b, compute_dtype=jnp.bfloat16))
    ref_bf16 = jnp.stack([reference_forward(x[b], layers, fc_w, fc_b,
                                            compute_dtype=jnp.bfloat16) for b in range(B)])
    np.testing.assert_allclose(np.asarray(out_bf16), np.asarray(ref_bf16),
                               atol=2e-2, rtol=2e-2)

    print("KERNEL_OK")
</pallas_src>

<mosaic_0001>
module attributes {stable_mosaic.version = 11 : i64} {
  func.func @convnet_kernel(%arg0: i32, %arg1: memref<1x16x8xf32, #tpu.memory_space<vmem>>, %arg2: memref<24x32xf32, #tpu.memory_space<vmem>>, %arg3: memref<1x32xf32, #tpu.memory_space<vmem>>, %arg4: memref<1x32xf32, #tpu.memory_space<vmem>>, %arg5: memref<96x32xf32, #tpu.memory_space<vmem>>, %arg6: memref<1x32xf32, #tpu.memory_space<vmem>>, %arg7: memref<1x32xf32, #tpu.memory_space<vmem>>, %arg8: memref<96x16xf32, #tpu.memory_space<vmem>>, %arg9: memref<1x16xf32, #tpu.memory_space<vmem>>, %arg10: memref<1x16xf32, #tpu.memory_space<vmem>>, %arg11: memref<48x16xf32, #tpu.memory_space<vmem>>, %arg12: memref<1x16xf32, #tpu.memory_space<vmem>>, %arg13: memref<1x16xf32, #tpu.memory_space<vmem>>, %arg14: memref<16x128xf32, #tpu.memory_space<vmem>>, %arg15: memref<1x128xf32, #tpu.memory_space<vmem>>, %arg16: memref<1x16x128xf32, #tpu.memory_space<vmem>>) attributes {dimension_semantics = [#tpu.dimension_semantics<parallel>], iteration_bounds = array<i64: 4>, scalar_prefetch = 0 : i64, scratch_operands = 0 : i64, tpu.core_type = #tpu.core_type<tc>, window_params = [{transform_indices = @transform_0, window_bounds = array<i64: 1, 16, 8>}, {pipeline_mode = #tpu.pipeline_mode<synchronous>, transform_indices = @transform_1, window_bounds = array<i64: 24, 32>}, {pipeline_mode = #tpu.pipeline_mode<synchronous>, transform_indices = @transform_2, window_bounds = array<i64: 1, 32>}, {pipeline_mode = #tpu.pipeline_mode<synchronous>, transform_indices = @transform_3, window_bounds = array<i64: 1, 32>}, {pipeline_mode = #tpu.pipeline_mode<synchronous>, transform_indices = @transform_4, window_bounds = array<i64: 96, 32>}, {pipeline_mode = #tpu.pipeline_mode<synchronous>, transform_indices = @transform_5, window_bounds = array<i64: 1, 32>}, {pipeline_mode = #tpu.pipeline_mode<synchronous>, transform_indices = @transform_6, window_bounds = array<i64: 1, 32>}, {pipeline_mode = #tpu.pipeline_mode<synchronous>, transform_indices = @transform_7, window_bounds = array<i64: 96, 16>}, {pipeline_mode = #tpu.pipeline_mode<synchronous>, transform_indices = @transform_8, window_bounds = array<i64: 1, 16>}, {pipeline_mode = #tpu.pipeline_mode<synchronous>, transform_indices = @transform_9, window_bounds = array<i64: 1, 16>}, {pipeline_mode = #tpu.pipeline_mode<synchronous>, transform_indices = @transform_10, window_bounds = array<i64: 48, 16>}, {pipeline_mode = #tpu.pipeline_mode<synchronous>, transform_indices = @transform_11, window_bounds = array<i64: 1, 16>}, {pipeline_mode = #tpu.pipeline_mode<synchronous>, transform_indices = @transform_12, window_bounds = array<i64: 1, 16>}, {pipeline_mode = #tpu.pipeline_mode<synchronous>, transform_indices = @transform_13, window_bounds = array<i64: 16, 128>}, {pipeline_mode = #tpu.pipeline_mode<synchronous>, transform_indices = @transform_14, window_bounds = array<i64: 1, 128>}, {transform_indices = @transform_15, window_bounds = array<i64: 1, 16, 128>}]} {
    %c0 = arith.constant 0 : index
    %c0_0 = arith.constant 0 : index
    %c0_1 = arith.constant 0 : index
    %0 = vector.load %arg1[%c0, %c0_0, %c0_1] : memref<1x16x8xf32, #tpu.memory_space<vmem>>, vector<1x16x8xf32>
    %1 = vector.shape_cast %0 : vector<1x16x8xf32> to vector<16x8xf32>
    %cst = arith.constant 0.000000e+00 : f32
    %2 = vector.broadcast %cst : f32 to vector<1x8xf32>
    %3 = tpu.concatenate %2, %1, %2 in 0 : vector<1x8xf32>, vector<16x8xf32>, vector<1x8xf32> -> vector<18x8xf32>
    %4 = vector.extract_strided_slice %3 {offsets = [0, 0], sizes = [16, 8], strides = [1, 1]} : vector<18x8xf32> to vector<16x8xf32>
    %5 = vector.extract_strided_slice %3 {offsets = [1, 0], sizes = [16, 8], strides = [1, 1]} : vector<18x8xf32> to vector<16x8xf32>
    %6 = vector.extract_strided_slice %3 {offsets = [2, 0], sizes = [16, 8], strides = [1, 1]} : vector<18x8xf32> to vector<16x8xf32>
    %7 = tpu.concatenate %4, %5, %6 in 1 : vector<16x8xf32>, vector<16x8xf32>, vector<16x8xf32> -> vector<16x24xf32>
    %c0_2 = arith.constant 0 : index
    %c0_3 = arith.constant 0 : index
    %8 = vector.load %arg2[%c0_2, %c0_3] : memref<24x32xf32, #tpu.memory_space<vmem>>, vector<24x32xf32>
    %cst_4 = arith.constant dense<0.000000e+00> : vector<16x32xf32>
    %9 = tpu.matmul %7, %8, %cst_4 {dimension_numbers = #tpu.dot_dimension_numbers<[1], [0], [0], [1], [0, 0, 1, 1], [], []>} : vector<16x24xf32>, vector<24x32xf32>, vector<16x32xf32> -> vector<16x32xf32>
    %cst_5 = arith.constant dense<0.000000e+00> : vector<32xf32>
    %10 = vector.multi_reduction <add>, %9, %cst_5 [0] : vector<16x32xf32> to vector<32xf32>
    %11 = vector.shape_cast %10 : vector<32xf32> to vector<1x32xf32>
    %cst_6 = arith.constant 1.600000e+01 : f32
    %12 = vector.broadcast %cst_6 : f32 to vector<1x32xf32>
    %13 = arith.divf %11, %12 : vector<1x32xf32>
    %14 = vector.broadcast %13 : vector<1x32xf32> to vector<16x32xf32>
    %15 = arith.subf %9, %14 : vector<16x32xf32>
    %16 = arith.mulf %15, %15 : vector<16x32xf32>
    %cst_7 = arith.constant dense<0.000000e+00> : vector<32xf32>
    %17 = vector.multi_reduction <add>, %16, %cst_7 [0] : vector<16x32xf32> to vector<32xf32>
    %18 = vector.shape_cast %17 : vector<32xf32> to vector<1x32xf32>
    %cst_8 = arith.constant 1.600000e+01 : f32
    %19 = vector.broadcast %cst_8 : f32 to vector<1x32xf32>
    %20 = arith.divf %18, %19 : vector<1x32xf32>
    %c0_9 = arith.constant 0 : index
    %c0_10 = arith.constant 0 : index
    %21 = vector.load %arg3[%c0_9, %c0_10] : memref<1x32xf32, #tpu.memory_space<vmem>>, vector<1x32xf32>
    %cst_11 = arith.constant 9.99999974E-6 : f32
    %22 = vector.broadcast %cst_11 : f32 to vector<1x32xf32>
    %23 = arith.addf %20, %22 : vector<1x32xf32>
    %24 = math.rsqrt %23 : vector<1x32xf32>
    %25 = arith.mulf %21, %24 : vector<1x32xf32>
    %26 = vector.broadcast %25 : vector<1x32xf32> to vector<16x32xf32>
    %27 = arith.mulf %15, %26 : vector<16x32xf32>
    %c0_12 = arith.constant 0 : index
    %c0_13 = arith.constant 0 : index
    %28 = vector.load %arg4[%c0_12, %c0_13] : memref<1x32xf32, #tpu.memory_space<vmem>>, vector<1x32xf32>
    %29 = vector.broadcast %28 : vector<1x32xf32> to vector<16x32xf32>
    %30 = arith.addf %27, %29 : vector<16x32xf32>
    %cst_14 = arith.constant 0.000000e+00 : f32
    %31 = vector.broadcast %cst_14 : f32 to vector<16x32xf32>
    %32 = arith.maximumf %30, %31 : vector<16x32xf32>
    %cst_15 = arith.constant 0.000000e+00 : f32
    %33 = vector.broadcast %cst_15 : f32 to vector<1x32xf32>
    %34 = tpu.concatenate %33, %32, %33 in 0 : vector<1x32xf32>, vector<16x32xf32>, vector<1x32xf32> -> vector<18x32xf32>
    %35 = vector.extract_strided_slice %34 {offsets = [0, 0], sizes = [16, 32], strides = [1, 1]} : vector<18x32xf32> to vector<16x32xf32>
    %36 = vector.extract_strided_slice %34 {offsets = [1, 0], sizes = [16, 32], strides = [1, 1]} : vector<18x32xf32> to vector<16x32xf32>
    %37 = vector.extract_strided_slice %34 {offsets = [2, 0], sizes = [16, 32], strides = [1, 1]} : vector<18x32xf32> to vector<16x32xf32>
    %38 = tpu.concatenate %35, %36, %37 in 1 : vector<16x32xf32>, vector<16x32xf32>, vector<16x32xf32> -> vector<16x96xf32>
    %c0_16 = arith.constant 0 : index
    %c0_17 = arith.constant 0 : index
    %39 = vector.load %arg5[%c0_16, %c0_17] : memref<96x32xf32, #tpu.memory_space<vmem>>, vector<96x32xf32>
    %cst_18 = arith.constant dense<0.000000e+00> : vector<16x32xf32>
    %40 = tpu.matmul %38, %39, %cst_18 {dimension_numbers = #tpu.dot_dimension_numbers<[1], [0], [0], [1], [0, 0, 1, 1], [], []>} : vector<16x96xf32>, vector<96x32xf32>, vector<16x32xf32> -> vector<16x32xf32>
    %cst_19 = arith.constant dense<0.000000e+00> : vector<32xf32>
    %41 = vector.multi_reduction <add>, %40, %cst_19 [0] : vector<16x32xf32> to vector<32xf32>
    %42 = vector.shape_cast %41 : vector<32xf32> to vector<1x32xf32>
    %cst_20 = arith.constant 1.600000e+01 : f32
    %43 = vector.broadcast %cst_20 : f32 to vector<1x32xf32>
    %44 = arith.divf %42, %43 : vector<1x32xf32>
    %45 = vector.broadcast %44 : vector<1x32xf32> to vector<16x32xf32>
    %46 = arith.subf %40, %45 : vector<16x32xf32>
    %47 = arith.mulf %46, %46 : vector<16x32xf32>
    %cst_21 = arith.constant dense<0.000000e+00> : vector<32xf32>
    %48 = vector.multi_reduction <add>, %47, %cst_21 [0] : vector<16x32xf32> to vector<32xf32>
    %49 = vector.shape_cast %48 : vector<32xf32> to vector<1x32xf32>
    %cst_22 = arith.constant 1.600000e+01 : f32
    %50 = vector.broadcast %cst_22 : f32 to vector<1x32xf32>
    %51 = arith.divf %49, %50 : vector<1x32xf32>
    %c0_23 = arith.constant 0 : index
    %c0_24 = arith.constant 0 : index
    %52 = vector.load %arg6[%c0_23, %c0_24] : memref<1x32xf32, #tpu.memory_space<vmem>>, vector<1x32xf32>
    %cst_25 = arith.constant 9.99999974E-6 : f32
    %53 = vector.broadcast %cst_25 : f32 to vector<1x32xf32>
    %54 = arith.addf %51, %53 : vector<1x32xf32>
    %55 = math.rsqrt %54 : vector<1x32xf32>
    %56 = arith.mulf %52, %55 : vector<1x32xf32>
    %57 = vector.broadcast %56 : vector<1x32xf32> to vector<16x32xf32>
    %58 = arith.mulf %46, %57 : vector<16x32xf32>
    %c0_26 = arith.constant 0 : index
    %c0_27 = arith.constant 0 : index
    %59 = vector.load %arg7[%c0_26, %c0_27] : memref<1x32xf32, #tpu.memory_space<vmem>>, vector<1x32xf32>
    %60 = vector.broadcast %59 : vector<1x32xf32> to vector<16x32xf32>
    %61 = arith.addf %58, %60 : vector<16x32xf32>
    %cst_28 = arith.constant 0.000000e+00 : f32
    %62 = vector.broadcast %cst_28 : f32 to vector<16x32xf32>
    %63 = arith.maximumf %61, %62 : vector<16x32xf32>
    %cst_29 = arith.constant 0.000000e+00 : f32
    %64 = vector.broadcast %cst_29 : f32 to vector<1x32xf32>
    %65 = tpu.concatenate %64, %63, %64 in 0 : vector<1x32xf32>, vector<16x32xf32>, vector<1x32xf32> -> vector<18x32xf32>
    %66 = vector.extract_strided_slice %65 {offsets = [0, 0], sizes = [16, 32], strides = [1, 1]} : vector<18x32xf32> to vector<16x32xf32>
    %67 = vector.extract_strided_slice %65 {offsets = [1, 0], sizes = [16, 32], strides = [1, 1]} : vector<18x32xf32> to vector<16x32xf32>
    %68 = vector.extract_strided_slice %65 {offsets = [2, 0], sizes = [16, 32], strides = [1, 1]} : vector<18x32xf32> to vector<16x32xf32>
    %69 = tpu.concatenate %66, %67, %68 in 1 : vector<16x32xf32>, vector<16x32xf32>, vector<16x32xf32> -> vector<16x96xf32>
    %c0_30 = arith.constant 0 : index
    %c0_31 = arith.constant 0 : index
    %70 = vector.load %arg8[%c0_30, %c0_31] : memref<96x16xf32, #tpu.memory_space<vmem>>, vector<96x16xf32>
    %cst_32 = arith.constant dense<0.000000e+00> : vector<16x16xf32>
    %71 = tpu.matmul %69, %70, %cst_32 {dimension_numbers = #tpu.dot_dimension_numbers<[1], [0], [0], [1], [0, 0, 1, 1], [], []>} : vector<16x96xf32>, vector<96x16xf32>, vector<16x16xf32> -> vector<16x16xf32>
    %cst_33 = arith.constant dense<0.000000e+00> : vector<16xf32>
    %72 = vector.multi_reduction <add>, %71, %cst_33 [0] : vector<16x16xf32> to vector<16xf32>
    %73 = vector.shape_cast %72 : vector<16xf32> to vector<1x16xf32>
    %cst_34 = arith.constant 1.600000e+01 : f32
    %74 = vector.broadcast %cst_34 : f32 to vector<1x16xf32>
    %75 = arith.divf %73, %74 : vector<1x16xf32>
    %76 = vector.broadcast %75 : vector<1x16xf32> to vector<16x16xf32>
    %77 = arith.subf %71, %76 : vector<16x16xf32>
    %78 = arith.mulf %77, %77 : vector<16x16xf32>
    %cst_35 = arith.constant dense<0.000000e+00> : vector<16xf32>
    %79 = vector.multi_reduction <add>, %78, %cst_35 [0] : vector<16x16xf32> to vector<16xf32>
    %80 = vector.shape_cast %79 : vector<16xf32> to vector<1x16xf32>
    %cst_36 = arith.constant 1.600000e+01 : f32
    %81 = vector.broadcast %cst_36 : f32 to vector<1x16xf32>
    %82 = arith.divf %80, %81 : vector<1x16xf32>
    %c0_37 = arith.constant 0 : index
    %c0_38 = arith.constant 0 : index
    %83 = vector.load %arg9[%c0_37, %c0_38] : memref<1x16xf32, #tpu.memory_space<vmem>>, vector<1x16xf32>
    %cst_39 = arith.constant 9.99999974E-6 : f32
    %84 = vector.broadcast %cst_39 : f32 to vector<1x16xf32>
    %85 = arith.addf %82, %84 : vector<1x16xf32>
    %86 = math.rsqrt %85 : vector<1x16xf32>
    %87 = arith.mulf %83, %86 : vector<1x16xf32>
    %88 = vector.broadcast %87 : vector<1x16xf32> to vector<16x16xf32>
    %89 = arith.mulf %77, %88 : vector<16x16xf32>
    %c0_40 = arith.constant 0 : index
    %c0_41 = arith.constant 0 : index
    %90 = vector.load %arg10[%c0_40, %c0_41] : memref<1x16xf32, #tpu.memory_space<vmem>>, vector<1x16xf32>
    %91 = vector.broadcast %90 : vector<1x16xf32> to vector<16x16xf32>
    %92 = arith.addf %89, %91 : vector<16x16xf32>
    %cst_42 = arith.constant 0.000000e+00 : f32
    %93 = vector.broadcast %cst_42 : f32 to vector<16x16xf32>
    %94 = arith.maximumf %92, %93 : vector<16x16xf32>
    %cst_43 = arith.constant 0.000000e+00 : f32
    %95 = vector.broadcast %cst_43 : f32 to vector<1x16xf32>
    %96 = tpu.concatenate %95, %94, %95 in 0 : vector<1x16xf32>, vector<16x16xf32>, vector<1x16xf32> -> vector<18x16xf32>
    %97 = vector.extract_strided_slice %96 {offsets = [0, 0], sizes = [16, 16], strides = [1, 1]} : vector<18x16xf32> to vector<16x16xf32>
    %98 = vector.extract_strided_slice %96 {offsets = [1, 0], sizes = [16, 16], strides = [1, 1]} : vector<18x16xf32> to vector<16x16xf32>
    %99 = vector.extract_strided_slice %96 {offsets = [2, 0], sizes = [16, 16], strides = [1, 1]} : vector<18x16xf32> to vector<16x16xf32>
    %100 = tpu.concatenate %97, %98, %99 in 1 : vector<16x16xf32>, vector<16x16xf32>, vector<16x16xf32> -> vector<16x48xf32>
    %c0_44 = arith.constant 0 : index
    %c0_45 = arith.constant 0 : index
    %101 = vector.load %arg11[%c0_44, %c0_45] : memref<48x16xf32, #tpu.memory_space<vmem>>, vector<48x16xf32>
    %cst_46 = arith.constant dense<0.000000e+00> : vector<16x16xf32>
    %102 = tpu.matmul %100, %101, %cst_46 {dimension_numbers = #tpu.dot_dimension_numbers<[1], [0], [0], [1], [0, 0, 1, 1], [], []>} : vector<16x48xf32>, vector<48x16xf32>, vector<16x16xf32> -> vector<16x16xf32>
    %cst_47 = arith.constant dense<0.000000e+00> : vector<16xf32>
    %103 = vector.multi_reduction <add>, %102, %cst_47 [0] : vector<16x16xf32> to vector<16xf32>
    %104 = vector.shape_cast %103 : vector<16xf32> to vector<1x16xf32>
    %cst_48 = arith.constant 1.600000e+01 : f32
    %105 = vector.broadcast %cst_48 : f32 to vector<1x16xf32>
    %106 = arith.divf %104, %105 : vector<1x16xf32>
    %107 = vector.broadcast %106 : vector<1x16xf32> to vector<16x16xf32>
    %108 = arith.subf %102, %107 : vector<16x16xf32>
    %109 = arith.mulf %108, %108 : vector<16x16xf32>
    %cst_49 = arith.constant dense<0.000000e+00> : vector<16xf32>
    %110 = vector.multi_reduction <add>, %109, %cst_49 [0] : vector<16x16xf32> to vector<16xf32>
    %111 = vector.shape_cast %110 : vector<16xf32> to vector<1x16xf32>
    %cst_50 = arith.constant 1.600000e+01 : f32
    %112 = vector.broadcast %cst_50 : f32 to vector<1x16xf32>
    %113 = arith.divf %111, %112 : vector<1x16xf32>
    %c0_51 = arith.constant 0 : index
    %c0_52 = arith.constant 0 : index
    %114 = vector.load %arg12[%c0_51, %c0_52] : memref<1x16xf32, #tpu.memory_space<vmem>>, vector<1x16xf32>
    %cst_53 = arith.constant 9.99999974E-6 : f32
    %115 = vector.broadcast %cst_53 : f32 to vector<1x16xf32>
    %116 = arith.addf %113, %115 : vector<1x16xf32>
    %117 = math.rsqrt %116 : vector<1x16xf32>
    %118 = arith.mulf %114, %117 : vector<1x16xf32>
    %119 = vector.broadcast %118 : vector<1x16xf32> to vector<16x16xf32>
    %120 = arith.mulf %108, %119 : vector<16x16xf32>
    %c0_54 = arith.constant 0 : index
    %c0_55 = arith.constant 0 : index
    %121 = vector.load %arg13[%c0_54, %c0_55] : memref<1x16xf32, #tpu.memory_space<vmem>>, vector<1x16xf32>
    %122 = vector.broadcast %121 : vector<1x16xf32> to vector<16x16xf32>
    %123 = arith.addf %120, %122 : vector<16x16xf32>
    %cst_56 = arith.constant 0.000000e+00 : f32
    %124 = vector.broadcast %cst_56 : f32 to vector<16x16xf32>
    %125 = arith.maximumf %123, %124 : vector<16x16xf32>
    %c0_57 = arith.constant 0 : index
    %c0_58 = arith.constant 0 : index
    %126 = vector.load %arg14[%c0_57, %c0_58] : memref<16x128xf32, #tpu.memory_space<vmem>>, vector<16x128xf32>
    %cst_59 = arith.constant dense<0.000000e+00> : vector<16x128xf32>
    %127 = tpu.matmul %125, %126, %cst_59 {dimension_numbers = #tpu.dot_dimension_numbers<[1], [0], [0], [1], [0, 0, 1, 1], [], []>} : vector<16x16xf32>, vector<16x128xf32>, vector<16x128xf32> -> vector<16x128xf32>
    %c0_60 = arith.constant 0 : index
    %c0_61 = arith.constant 0 : index
    %128 = vector.load %arg15[%c0_60, %c0_61] : memref<1x128xf32, #tpu.memory_space<vmem>>, vector<1x128xf32>
    %129 = vector.broadcast %128 : vector<1x128xf32> to vector<16x128xf32>
    %130 = arith.addf %127, %129 : vector<16x128xf32>
    %c0_62 = arith.constant 0 : index
    %c0_63 = arith.constant 0 : index
    %c0_64 = arith.constant 0 : index
    %131 = vector.load %arg16[%c0_62, %c0_63, %c0_64] : memref<1x16x128xf32, #tpu.memory_space<vmem>>, vector<1x16x128xf32>
    %132 = vector.shape_cast %131 : vector<1x16x128xf32> to vector<16x128xf32>
    %133 = vector.shape_cast %130 : vector<16x128xf32> to vector<1x16x128xf32>
    tpu.vector_store %arg16[%c0_62, %c0_63, %c0_64], %133 {strides = array<i32>} : memref<1x16x128xf32, #tpu.memory_space<vmem>>, vector<1x16x128xf32>,
    return
  }
  func.func @transform_0(%arg0: i32) -> (i32, i32, i32) {
    %c0_i32 = arith.constant 0 : i32
    %c0_i32_0 = arith.constant 0 : i32
    %c0_i32_1 = arith.constant 0 : i32
    return %arg0, %c0_i32, %c0_i32_0 : i32, i32, i32
  }
  func.func @transform_1(%arg0: i32) -> (i32, i32) {
    %c0_i32 = arith.constant 0 : i32
    %c0_i32_0 = arith.constant 0 : i32
    %c0_i32_1 = arith.constant 0 : i32
    return %c0_i32, %c0_i32_0 : i32, i32
  }
  func.func @transform_2(%arg0: i32) -> (i32, i32) {
    %c0_i32 = arith.constant 0 : i32
    %c0_i32_0 = arith.constant 0 : i32
    %c0_i32_1 = arith.constant 0 : i32
    return %c0_i32, %c0_i32_0 : i32, i32
  }
  func.func @transform_3(%arg0: i32) -> (i32, i32) {
    %c0_i32 = arith.constant 0 : i32
    %c0_i32_0 = arith.constant 0 : i32
    %c0_i32_1 = arith.constant 0 : i32
    return %c0_i32, %c0_i32_0 : i32, i32
  }
  func.func @transform_4(%arg0: i32) -> (i32, i32) {
    %c0_i32 = arith.constant 0 : i32
    %c0_i32_0 = arith.constant 0 : i32
    %c0_i32_1 = arith.constant 0 : i32
    return %c0_i32, %c0_i32_0 : i32, i32
  }
  func.func @transform_5(%arg0: i32) -> (i32, i32) {
    %c0_i32 = arith.constant 0 : i32
    %c0_i32_0 = arith.constant 0 : i32
    %c0_i32_1 = arith.constant 0 : i32
    return %c0_i32, %c0_i32_0 : i32, i32
  }
  func.func @transform_6(%arg0: i32) -> (i32, i32) {
    %c0_i32 = arith.constant 0 : i32
    %c0_i32_0 = arith.constant 0 : i32
    %c0_i32_1 = arith.constant 0 : i32
    return %c0_i32, %c0_i32_0 : i32, i32
  }
  func.func @transform_7(%arg0: i32) -> (i32, i32) {
    %c0_i32 = arith.constant 0 : i32
    %c0_i32_0 = arith.constant 0 : i32
    %c0_i32_1 = arith.constant 0 : i32
    return %c0_i32, %c0_i32_0 : i32, i32
  }
  func.func @transform_8(%arg0: i32) -> (i32, i32) {
    %c0_i32 = arith.constant 0 : i32
    %c0_i32_0 = arith.constant 0 : i32
    %c0_i32_1 = arith.constant 0 : i32
    return %c0_i32, %c0_i32_0 : i32, i32
  }
  func.func @transform_9(%arg0: i32) -> (i32, i32) {
    %c0_i32 = arith.constant 0 : i32
    %c0_i32_0 = arith.constant 0 : i32
    %c0_i32_1 = arith.constant 0 : i32
    return %c0_i32, %c0_i32_0 : i32, i32
  }
  func.func @transform_10(%arg0: i32) -> (i32, i32) {
    %c0_i32 = arith.constant 0 : i32
    %c0_i32_0 = arith.constant 0 : i32
    %c0_i32_1 = arith.constant 0 : i32
    return %c0_i32, %c0_i32_0 : i32, i32
  }
  func.func @transform_11(%arg0: i32) -> (i32, i32) {
    %c0_i32 = arith.constant 0 : i32
    %c0_i32_0 = arith.constant 0 : i32
    %c0_i32_1 = arith.constant 0 : i32
    return %c0_i32, %c0_i32_0 : i32, i32
  }
  func.func @transform_12(%arg0: i32) -> (i32, i32) {
    %c0_i32 = arith.constant 0 : i32
    %c0_i32_0 = arith.constant 0 : i32
    %c0_i32_1 = arith.constant 0 : i32
    return %c0_i32, %c0_i32_0 : i32, i32
  }
  func.func @transform_13(%arg0: i32) -> (i32, i32) {
    %c0_i32 = arith.constant 0 : i32
    %c0_i32_0 = arith.constant 0 : i32
    %c0_i32_1 = arith.constant 0 : i32
    return %c0_i32, %c0_i32_0 : i32, i32
  }
  func.func @transform_14(%arg0: i32) -> (i32, i32) {
    %c0_i32 = arith.constant 0 : i32
    %c0_i32_0 = arith.constant 0 : i32
    %c0_i32_1 = arith.constant 0 : i32
    return %c0_i32, %c0_i32_0 : i32, i32
  }
  func.func @transform_15(%arg0: i32) -> (i32, i32, i32) {
    %c0_i32 = arith.constant 0 : i32
    %c0_i32_0 = arith.constant 0 : i32
    %c0_i32_1 = arith.constant 0 : i32
    return %arg0, %c0_i32, %c0_i32_0 : i32, i32, i32
  }
}

</mosaic_0001>

<bundles_post_ra>
// kernel: tpu_custom_call.1
= control target key start
LH: loop header
LB: loop body
LE: loop exit
PB: predicated region body
PF: predicated region fallthrough
CT: control target
= control target key end

     0   :  { %20 = vsyncpa [#allocation3], 0  ;;  %s2051_s0 = inlined_call_operand.vmem [shape: f32[4,16,8], index: 0, kind: input, shape index: {}]   ;;  %s2052_s1 = inlined_call_operand.vmem [shape: f32[24,32], index: 1, kind: input, shape index: {}]   ;;  %s2053_s2 = inlined_call_operand.vmem [shape: f32[1,32], index: 2, kind: input, shape index: {}]   ;;  %s2054_s3 = inlined_call_operand.vmem [shape: f32[1,32], index: 3, kind: input, shape index: {}]   ;;  %s2055_s4 = inlined_call_operand.vmem [shape: f32[96,32], index: 4, kind: input, shape index: {}]   ;;  %s2056_s5 = inlined_call_operand.vmem [shape: f32[1,32], index: 5, kind: input, shape index: {}]   ;;  %s2057_s6 = inlined_call_operand.vmem [shape: f32[1,32], index: 6, kind: input, shape index: {}]   ;;  %s2058_s7 = inlined_call_operand.vmem [shape: f32[96,16], index: 7, kind: input, shape index: {}]   ;;  %s2059_s8 = inlined_call_operand.vmem [shape: f32[1,16], index: 8, kind: input, shape index: {}]   ;;  %s2060_s9 = inlined_call_operand.vmem [shape: f32[1,16], index: 9, kind: input, shape index: {}]   ;;  %s2061_s10 = inlined_call_operand.vmem [shape: f32[48,16], index: 10, kind: input, shape index: {}]   ;;  %s2062_s11 = inlined_call_operand.vmem [shape: f32[1,16], index: 11, kind: input, shape index: {}]   ;;  %s2063_s12 = inlined_call_operand.vmem [shape: f32[1,16], index: 12, kind: input, shape index: {}]   ;;  %s2064_s13 = inlined_call_operand.vmem [shape: f32[16,128], index: 13, kind: input, shape index: {}]   ;;  %s2065_s14 = inlined_call_operand.vmem [shape: f32[1,128], index: 14, kind: input, shape index: {}]   ;;  %s2066_s15 = inlined_call_operand.hbm [shape: f32[4,16,128], index: 15, kind: output, shape index: {}]  }
   0x1   :  { %22 = vsyncpa [#allocation3 + $0x1], 0  ;;  %s1730_s18 = smov 0   ;;  %s1732_s19 = smov 0  }
   0x2   :  { %s1734_s20 = smov 0   ;;  %s1736_s21 = smov 0  }
   0x3 LB: > { %2073 = sst [smem:[#allocation5_spill]] %s1630_s18  ;;  %s1751_s22 = sadd.s32 4294967295, %s1642_s21   ;;  %s1642_s21 = sphi %s1736_s21, %s2083_s21   ;;  %s1638_s20 = sphi %s1734_s20, %s2085_s20   ;;  %s1634_s19 = sphi %s1732_s19, %s2087_s19   ;;  %s1630_s18 = sphi %s1730_s18, %s2086_s18  }
   0x4   : > { %2074 = sst [smem:[#allocation6_spill]] %s1638_s20  ;;  %s1371_s23 = sadd.s32 4294967294, %s1642_s21  }
   0x5   : > { %s1755_s24 = sadd.s32 1, %s1642_s21   ;;  %s355_s25 = sadd.s32 1, %s1638_s20 }
   0x6   : > { %2075 = sst [smem:[#allocation7_spill]] %s1755_s24  ;;  %s352_s26 = ssub.s32 %s1642_s21, %s1755_s24 }
   0x7   : > { %p365_p0 = scmp.ne.s32.totalorder %s1638_s20, %s1634_s19  ;;  %p353_p1 = scmp.eq.s32.totalorder %s352_s26, 0 }
   0x8   : > { %p366_p2 = scmp.eq.s32.totalorder %s1751_s22, 3  ;;  %p371_p3 = scmp.ne.s32.totalorder %s1634_s19, %s1630_s18 }
   0x9   : > { %p372_p4 = scmp.eq.s32.totalorder %s1371_s23, 3  ;;  %p1374_p7 = scmp.ge.s32.totalorder %s1642_s21, 1 }
   0xa   : > { %s1766_s27 = scalar_select %p353_p1, %s1638_s20, %s355_s25  }
   0xb   : > { %p1768_p5 = por %p366_p2, %p365_p0  ;;  %p1772_p6 = por %p372_p4, %p371_p3 }
   0xc   : > { %2076 = sst [smem:[#allocation8_spill]] %s1766_s27  ;;  %p440_p8 = scmp.lt.s32.totalorder %s1642_s21, 5 }
   0xd   : > { %s2078_s29 = scalar_select %p1772_p6, 1, 0 }
   0xe   : > { %p441_p9 = pnand %p1374_p7, %p440_p8 }
   0xf   : > { %2079 = sst [smem:[#allocation9_spill]] %s2078_s29  ;;  %p488_p10 = scmp.lt.s32.totalorder (!%p441_p9), %s1751_s22, 3 }
  0x10   : > { %444 = sbr.rel (%p441_p9) target bundleno = 1782 (0x6f6), region = 80  ;;  %s1646_s27 = smov (!%p441_p9), 32  }
  0x11   : > { %s1647_s29 = smov (!%p441_p9), 64   ;;  %s485_s24 = sand.u32 (!%p441_p9), 1, %s1634_s19  }
  0x12   : > { %s1375_s30 = sshll.u32 (!%p441_p9), %s485_s24, 4  ;;  %s1399_s23 = sshll.u32 (!%p441_p9), %s1751_s22, 8 }
  0x13   : > { %s487_s17 = scalar_lea.vmem (!%p441_p9), [#allocation2], %s1375_s30 }
  0x15   : > { %v540_v0 = vld [vmem:[%s2052_s1 + $0x10] sm:$0xff]  ;;  %v539_v1 = vld [vmem:[%s2052_s1 + $0x8] sm:$0xff]  ;;  %s489_s25 = scalar_select %p488_p10, %s1751_s22, 3  ;;  %v538_v2 = vld [vmem:[%s2052_s1] sm:$0xff]  ;;  %vm497_vm0 = vcmask 1040384   ;;  %vm508_vm1 = vcmask 1046528  }
  0x16   : > { %1445 = vmatprep.subr.mxu0 %v540_v0  ;;  %vm520_vm2 = vcmask 1045504   ;;  %vm532_vm3 = vcmask 64512   ;;  %vm535_vm4 = vcmask 130048   ;;  %vm541_vm5 = vcmask 195584   ;;  %v722_v28 = vld [vmem:[%s2055_s4 + $0x58] sm:$0xff]  ;;  %v721_v29 = vld [vmem:[%s2055_s4 + $0x50] sm:$0xff] }
  0x17   : > { %1446 = vmatpush3.msra.mxu0 %v540_v0  ;;  %s1398_s20 = sshll.u32 %s489_s25, 4  ;;  %1454 = vmatprep.subr.mxu1 %v722_v28  ;;  %v720_v30 = vld [vmem:[%s2055_s4 + $0x48] sm:$0xff]  ;;  %v719_v31 = vld [vmem:[%s2055_s4 + $0x40] sm:$0xff]  ;;  %v718_v32 = vld [vmem:[%s2055_s4 + $0x38] sm:$0xff]  ;;  %vm623_vm6 = vcmask 261120   ;;  %v654_v0 = vlaneseq  ;;  %vm708_vm7 = vcmask 523264  }
  0x18   : > { %1447 = vmatprep.subr.mxu0 %v539_v1  ;;  %s492_s18 = scalar_lea.vmem %s2051_s0, %s1398_s20  ;;  %s1645_s20 = smov 16   ;;  %1455 = vmatpush3.msra.mxu1 %v722_v28  ;;  %v717_v33 = vld [vmem:[%s2055_s4 + $0x30] sm:$0xff]  ;;  %v716_v34 = vld [vmem:[%s2055_s4 + $0x28] sm:$0xff]  ;;  %v715_v35 = vld [vmem:[%s2055_s4 + $0x20] sm:$0xff]  ;;  %vm723_vm8 = vcmask 785408   ;;  %vm1074_vm9 = vcmask 392192  }
  0x19   : > { %1448 = vmatpush3.msra.mxu0 %v539_v1  ;;  %v493_v3 = vld [vmem:[%s492_s18] sm:$0xff]  ;;  %v494_v4 = vld [vmem:[%s492_s18 + $0x8] sm:$0xff]  ;;  %s2072_s18 = smov 8   ;;  %1456 = vmatprep.subr.mxu1 %v721_v29  ;;  %v714_v36 = vld [vmem:[%s2055_s4 + $0x18] sm:$0xff]  ;;  %v655_v1 = vshrl.u32 %v654_v0, 7  ;;  %s1648_s22 = smov [#allocation2]  }
  0x1a   : > { %1449 = vmatprep.subr.mxu0 %v538_v2  ;;  %v498_v5 = vrot.slane %v493_v3, 7  ;;  %v499_v6 = vrot.slane %v494_v4, 7  ;;  %1457 = vmatpush3.msra.mxu1 %v721_v29  ;;  %s1586_s16 = sshll.u32 %s1648_s22, 4  ;;  %s1587_s16 = int_to_ptr.vmem [resolvable:$false] %s1586_s16 }
  0x1b   : > { %1450 = vmatpush3.msra.mxu0 %v538_v2  ;;  %1458 = vmatprep.subr.mxu1 %v720_v30  ;;  %v649_v2 = vld [vmem:[%s2053_s2] sm:$0x1]  ;;  %v1839_v3 = vsub.s32 0, %v655_v1 }
  0x1c   : > { %v500_v7 = vsel %vm497_vm0, %v498_v5, %v499_v6  ;;  %v504_v8 = vsel %vm497_vm0, 0.0, %v498_v5  ;;  %v505_v9 = vsel %vm497_vm0, %v499_v6, 0.0  ;;  %1459 = vmatpush3.msra.mxu1 %v720_v30 }
  0x1d   : > { %v509_v10 = vrot.slane %v504_v8, 1  ;;  %v510_v11 = vrot.slane %v500_v7, 1  ;;  %v521_v12 = vrot.slane %v504_v8, 2  ;;  %v522_v13 = vrot.slane %v500_v7, 2  ;;  %1460 = vmatprep.subr.mxu1 %v719_v31 }
  0x1e   : > { %v512_v14 = vrot.slane %v505_v9, 1  ;;  %v524_v15 = vrot.slane %v505_v9, 2  ;;  %1461 = vmatpush3.msra.mxu1 %v719_v31  ;;  %v712_v9 = vld [vmem:[%s2055_s4 + $0x8] sm:$0xff] }
  0x1f   : > { %v511_v16 = vsel %vm508_vm1, %v509_v10, %v510_v11  ;;  %v523_v17 = vsel %vm520_vm2, %v521_v12, %v522_v13  ;;  %1462 = vmatprep.subr.mxu1 %v718_v32 }
  0x20   : > { %514 = vrot.lane.b32.xlu0 %v511_v16, %s2072_s18  ;;  %526 = vrot.lane.b32.xlu1 %v523_v17, %s1645_s20  ;;  %v513_v18 = vsel %vm508_vm1, %v510_v11, %v512_v14  ;;  %v525_v19 = vsel %vm520_vm2, %v522_v13, %v524_v15  ;;  %v711_v14 = vld [vmem:[%s2055_s4] sm:$0xff] }
  0x21   : > { %1463 = vmatpush3.msra.mxu1 %v718_v32 }
  0x22   : > { %1464 = vmatprep.subr.mxu1 %v717_v33 }
  0x23   : > { %1465 = vmatpush3.msra.mxu1 %v717_v33 }
  0x24   : > { %516 = vrot.lane.b32.xlu0 %v513_v18, %s2072_s18  ;;  %528 = vrot.lane.b32.xlu1 %v525_v19, %s1645_s20  ;;  %s2010_s18 = scalar_lea.sflag [#allocation3], %s485_s24 }
  0x25   : > { %1466 = vmatprep.subr.mxu1 %v716_v34 }
  0x26   : > { %1467 = vmatpush3.msra.mxu1 %v716_v34 }
  0x27   : > { %1468 = vmatprep.subr.mxu1 %v715_v35 }
  0x28   : > { %1469 = vmatpush3.msra.mxu1 %v715_v35 }
  0x29   : > { %1470 = vmatprep.subr.mxu1 %v714_v36 }
  0x2a   : > { %1471 = vmatpush3.msra.mxu1 %v714_v36 }
  0x92   : > { %v515_v20 = vpop.permute.xlu0 %514  ;;  %v527_v21 = vpop.permute.xlu1 %526 }
  0x93   : > { %v533_v22 = vsel %vm532_vm3, %v504_v8, %v515_v20  ;;  %v713_v8 = vld [vmem:[%s2055_s4 + $0x10] sm:$0xff] }
  0x94   : > { %v536_v23 = vsel %vm535_vm4, %v533_v22, %v527_v21  ;;  %1472 = vmatprep.subr.mxu1 %v713_v8 }
  0x95   : > { %1451 = vmatprep.mubr.msk.f32.mxu0 %vm541_vm5, %v536_v23  ;;  %1473 = vmatpush3.msra.mxu1 %v713_v8 }
  0x96   : > { %v517_v24 = vpop.permute.xlu0 %516  ;;  %v529_v25 = vpop.permute.xlu1 %528  ;;  %1474 = vmatprep.subr.mxu1 %v712_v9 }
  0x97   : > { %v534_v26 = vsel %vm532_vm3, %v500_v7, %v517_v24  ;;  %v1380_v7 = vld [vmem:[%s2054_s3] ss:$0 sm:$0xff]  ;;  %1475 = vmatpush3.msra.mxu1 %v712_v9 }
  0x98   : > { %v537_v27 = vsel %vm535_vm4, %v534_v26, %v529_v25  ;;  %1476 = vmatprep.subr.mxu1 %v711_v14 }
  0x99   : > { %1452 = vmatmul.mubr.msk.f32.vlgmr.msra.gmra.mxu0 %vm541_vm5, %v537_v27  ;;  %1477 = vmatpush3.msra.mxu1 %v711_v14 }
 0x159   : > { %v1453_v37 = vpop.f32.mrf.mxu0 }
 0x15a   : > { %v625_v39 = vsel %vm623_vm6, %v1453_v37, 0.0 }
 0x15b   : > { %v614_v38 = vpop.f32.mrf.mxu0 }
 0x15c   : > { %v624_v40 = vsel %vm623_vm6, %v614_v38, 0.0 }
 0x15d   : > { %v626_v41 = vadd.f32 %v625_v39, %v624_v40  ;;  %v901_v40 = vld [vmem:[%s2058_s7 + $0x58] sm:$0xff] }
 0x15e   : > { %1481 = vmatprep.subr.mxu0 %v901_v40 }
 0x15f   : > { %v627_v42 = vrot.slane %v626_v41, 4  ;;  %1482 = vmatpush3.msra.mxu0 %v901_v40 }
 0x161   : > { %v628_v43 = vadd.f32 %v627_v42, %v626_v41  ;;  %v900_v41 = vld [vmem:[%s2058_s7 + $0x50] sm:$0xff]  ;;  %v899_v42 = vld [vmem:[%s2058_s7 + $0x48] sm:$0xff] }
 0x162   : > { %1483 = vmatprep.subr.mxu0 %v900_v41 }
 0x163   : > { %v629_v44 = vrot.slane %v628_v43, 2  ;;  %1484 = vmatpush3.msra.mxu0 %v900_v41 }
 0x164   : > { %1485 = vmatprep.subr.mxu0 %v899_v42 }
 0x165   : > { %v630_v45 = vadd.f32 %v629_v44, %v628_v43  ;;  %v898_v43 = vld [vmem:[%s2058_s7 + $0x40] sm:$0xff]  ;;  %1486 = vmatpush3.msra.mxu0 %v899_v42  ;;  %v897_v44 = vld [vmem:[%s2058_s7 + $0x38] sm:$0xff] }
 0x166   : > { %1487 = vmatprep.subr.mxu0 %v898_v43 }
 0x167   : > { %v631_v46 = vrot.slane %v630_v45, 1  ;;  %1488 = vmatpush3.msra.mxu0 %v898_v43 }
 0x168   : > { %1489 = vmatprep.subr.mxu0 %v897_v44 }
 0x169   : > { %v632_v47 = vadd.f32 %v631_v46, %v630_v45  ;;  %v896_v45 = vld [vmem:[%s2058_s7 + $0x30] sm:$0xff]  ;;  %1490 = vmatpush3.msra.mxu0 %v897_v44  ;;  %v895_v46 = vld [vmem:[%s2058_s7 + $0x28] sm:$0xff] }
 0x16a   : > { %1491 = vmatprep.subr.mxu0 %v896_v45 }
 0x16b   : > { %v634_v48 = vmul.f32 0.0625, %v632_v47  ;;  %1492 = vmatpush3.msra.mxu0 %v896_v45  ;;  %v894_v47 = vld [vmem:[%s2058_s7 + $0x20] sm:$0xff] }
 0x16c   : > { %1493 = vmatprep.subr.mxu0 %v895_v46 }
 0x16d   : > { %v635_v49 = vsub.f32 %v614_v38, %v634_v48  ;;  %v636_v50 = vsub.f32 %v1453_v37, %v634_v48  ;;  %1494 = vmatpush3.msra.mxu0 %v895_v46  ;;  %v893_v48 = vld [vmem:[%s2058_s7 + $0x18] sm:$0xff] }
 0x16e   : > { %1495 = vmatprep.subr.mxu0 %v894_v47 }
 0x16f   : > { %v637_v51 = vmul.f32 %v635_v49, %v635_v49  ;;  %v638_v52 = vmul.f32 %v636_v50, %v636_v50  ;;  %1496 = vmatpush3.msra.mxu0 %v894_v47 }
 0x170   : > { %1497 = vmatprep.subr.mxu0 %v893_v48 }
 0x171   : > { %v639_v53 = vsel %vm623_vm6, %v637_v51, 0.0  ;;  %v640_v54 = vsel %vm623_vm6, %v638_v52, 0.0  ;;  %1498 = vmatpush3.msra.mxu0 %v893_v48 }
 0x172   : > { %v641_v55 = vadd.f32 %v640_v54, %v639_v53 }
 0x174   : > { %v642_v56 = vrot.slane %v641_v55, 4 }
 0x176   : > { %v643_v57 = vadd.f32 %v642_v56, %v641_v55 }
 0x178   : > { %v644_v58 = vrot.slane %v643_v57, 2 }
 0x17a   : > { %v645_v59 = vadd.f32 %v644_v58, %v643_v57 }
 0x17c   : > { %v646_v60 = vrot.slane %v645_v59, 1 }
 0x17e   : > { %v647_v61 = vadd.f32 %v646_v60, %v645_v59 }
 0x180   : > { %v648_v62 = vmul.f32 0.0625, %v647_v61 }
 0x182   : > { %v650_v63 = vadd.f32 1e-05, %v648_v62 }
 0x184   : > { %1574 = vrsqrt.f32 %v650_v63 }
 0x191   : > { %v1575_v4 = vpop.eup %1574 }
 0x192   : > { %v652_v5 = vmul.f32 %v1575_v4, %v649_v2 }
 0x194   : > { %v657_v6 = vrot.slane %v652_v5, %v1839_v3 }
 0x196   : > { %v659_v10 = vmul.f32 %v657_v6, %v635_v49  ;;  %v660_v11 = vmul.f32 %v657_v6, %v636_v50 }
 0x198   : > { %v668_v12 = vadd.f32 %v1380_v7, %v659_v10  ;;  %v669_v13 = vadd.f32 %v1380_v7, %v660_v11 }
 0x19a   : > { %v670_v15 = vmax.f32 %v668_v12, 0.0  ;;  %v671_v16 = vmax.f32 %v669_v13, 0.0  ;;  %v829_v13 = vld [vmem:[%s2056_s5] sm:$0x1] }
 0x19c   : > { %v674_v17 = vrot.slane %v670_v15, 7  ;;  %v675_v18 = vrot.slane %v671_v16, 7 }
 0x19e   : > { %v676_v19 = vsel %vm497_vm0, %v674_v17, %v675_v18  ;;  %v681_v20 = vsel %vm497_vm0, %v675_v18, 0.0  ;;  %v680_v21 = vsel %vm497_vm0, 0.0, %v674_v17  ;;  %v1383_v17 = vld [vmem:[%s2057_s6] ss:$0 sm:$0xff]  ;;  %v892_v18 = vld [vmem:[%s2058_s7 + $0x10] sm:$0xff] }
 0x19f   : > { %v685_v22 = vrot.slane %v676_v19, 1  ;;  %v687_v23 = vrot.slane %v681_v20, 1  ;;  %v684_v24 = vrot.slane %v680_v21, 1  ;;  %v696_v25 = vrot.slane %v676_v19, 2  ;;  %1499 = vmatprep.subr.mxu0 %v892_v18 }
 0x1a0   : > { %v698_v28 = vrot.slane %v681_v20, 2  ;;  %v695_v29 = vrot.slane %v680_v21, 2  ;;  %1500 = vmatpush3.msra.mxu0 %v892_v18 }
 0x1a1   : > { %v688_v26 = vsel %vm508_vm1, %v685_v22, %v687_v23  ;;  %v686_v27 = vsel %vm508_vm1, %v684_v24, %v685_v22  ;;  %v890_v24 = vld [vmem:[%s2058_s7] sm:$0xff] }
 0x1a2   : > { %691 = vrot.lane.b32.xlu1 %v688_v26, %s1646_s27  ;;  %689 = vrot.lane.b32.xlu0 %v686_v27, %s1646_s27  ;;  %v699_v30 = vsel %vm520_vm2, %v696_v25, %v698_v28  ;;  %v697_v31 = vsel %vm520_vm2, %v695_v29, %v696_v25 }
 0x1a6   : > { %702 = vrot.lane.b32.xlu1 %v699_v30, %s1647_s29  ;;  %700 = vrot.lane.b32.xlu0 %v697_v31, %s1647_s29 }
 0x214   : > { %v692_v32 = vpop.permute.xlu1 %691  ;;  %v690_v33 = vpop.permute.xlu0 %689 }
 0x215   : > { %v707_v34 = vsel %vm623_vm6, %v676_v19, %v692_v32  ;;  %v706_v35 = vsel %vm623_vm6, %v680_v21, %v690_v33  ;;  %v891_v19 = vld [vmem:[%s2058_s7 + $0x8] sm:$0xff] }
 0x216   : > { %1501 = vmatprep.subr.mxu0 %v891_v19 }
 0x217   : > { %1502 = vmatpush3.msra.mxu0 %v891_v19 }
 0x218   : > { %v703_v36 = vpop.permute.xlu1 %702  ;;  %v701_v37 = vpop.permute.xlu0 %700  ;;  %1503 = vmatprep.subr.mxu0 %v890_v24 }
 0x219   : > { %v710_v38 = vsel %vm708_vm7, %v707_v34, %v703_v36  ;;  %v709_v39 = vsel %vm708_vm7, %v706_v35, %v701_v37  ;;  %1504 = vmatpush3.msra.mxu0 %v890_v24 }
 0x21a   : > { %1478 = vmatprep.mubr.msk.f32.mxu1 %vm723_vm8, %v709_v39 }
 0x21b   : > { %1479 = vmatmul.mubr.msk.f32.vlgmr.msra.gmra.mxu1 %vm723_vm8, %v710_v38 }
 0x2db   : > { %v1480_v49 = vpop.f32.mrf.mxu1 }
 0x2dc   : > { %v806_v51 = vsel %vm623_vm6, %v1480_v49, 0.0 }
 0x2dd   : > { %v796_v50 = vpop.f32.mrf.mxu1 }
 0x2de   : > { %v805_v52 = vsel %vm623_vm6, %v796_v50, 0.0 }
 0x2df   : > { %v807_v53 = vadd.f32 %v806_v51, %v805_v52  ;;  %v1072_v51 = vld [vmem:[%s2061_s10 + $0x20] sm:$0xff]  ;;  %v1071_v52 = vld [vmem:[%s2061_s10 + $0x18] sm:$0xff] }
 0x2e1   : > { %v808_v54 = vrot.slane %v807_v53, 4 }
 0x2e3   : > { %v809_v55 = vadd.f32 %v808_v54, %v807_v53 }
 0x2e5   : > { %v810_v56 = vrot.slane %v809_v55, 2 }
 0x2e7   : > { %v811_v57 = vadd.f32 %v810_v56, %v809_v55 }
 0x2e9   : > { %v812_v58 = vrot.slane %v811_v57, 1 }
 0x2eb   : > { %v813_v59 = vadd.f32 %v812_v58, %v811_v57 }
 0x2ed   : > { %v814_v60 = vmul.f32 0.0625, %v813_v59 }
 0x2ef   : > { %v815_v61 = vsub.f32 %v796_v50, %v814_v60  ;;  %v816_v62 = vsub.f32 %v1480_v49, %v814_v60  ;;  %v1073_v50 = vld [vmem:[%s2061_s10 + $0x28] sm:$0xff] }
 0x2f0   : > { %1508 = vmatprep.subr.mxu1 %v1073_v50 }
 0x2f1   : > { %v817_v63 = vmul.f32 %v815_v61, %v815_v61  ;;  %v818_v0 = vmul.f32 %v816_v62, %v816_v62  ;;  %1509 = vmatpush3.msra.mxu1 %v1073_v50 }
 0x2f2   : > { %1510 = vmatprep.subr.mxu1 %v1072_v51 }
 0x2f3   : > { %v819_v1 = vsel %vm623_vm6, %v817_v63, 0.0  ;;  %v820_v2 = vsel %vm623_vm6, %v818_v0, 0.0  ;;  %1511 = vmatpush3.msra.mxu1 %v1072_v51 }
 0x2f4   : > { %v821_v4 = vadd.f32 %v820_v2, %v819_v1  ;;  %1512 = vmatprep.subr.mxu1 %v1071_v52 }
 0x2f5   : > { %1513 = vmatpush3.msra.mxu1 %v1071_v52 }
 0x2f6   : > { %v822_v5 = vrot.slane %v821_v4, 4 }
 0x2f8   : > { %v823_v6 = vadd.f32 %v822_v5, %v821_v4 }
 0x2fa   : > { %v824_v7 = vrot.slane %v823_v6, 2 }
 0x2fc   : > { %v825_v8 = vadd.f32 %v824_v7, %v823_v6 }
 0x2fe   : > { %v826_v9 = vrot.slane %v825_v8, 1 }
 0x300   : > { %v827_v10 = vadd.f32 %v826_v9, %v825_v8 }
 0x302   : > { %v828_v11 = vmul.f32 0.0625, %v827_v10 }
 0x304   : > { %v830_v12 = vadd.f32 1e-05, %v828_v11 }
 0x306   : > { %1576 = vrsqrt.f32 %v830_v12 }
 0x313   : > { %v1577_v14 = vpop.eup %1576 }
 0x314   : > { %v832_v15 = vmul.f32 %v1577_v14, %v829_v13 }
 0x316   : > { %v837_v16 = vrot.slane %v832_v15, %v1839_v3 }
 0x318   : > { %v839_v20 = vmul.f32 %v837_v16, %v815_v61  ;;  %v840_v21 = vmul.f32 %v837_v16, %v816_v62 }
 0x31a   : > { %v848_v22 = vadd.f32 %v1383_v17, %v839_v20  ;;  %v849_v23 = vadd.f32 %v1383_v17, %v840_v21  ;;  %v1007_v17 = vld [vmem:[%s2059_s8] sm:$0x1] }
 0x31b   : > { %v1386_v21 = vld [vmem:[%s2060_s9] ss:$0 sm:$0xff] }
 0x31c   : > { %v850_v25 = vmax.f32 %v848_v22, 0.0  ;;  %v851_v26 = vmax.f32 %v849_v23, 0.0  ;;  %v1070_v22 = vld [vmem:[%s2061_s10 + $0x10] sm:$0xff]  ;;  %v1069_v23 = vld [vmem:[%s2061_s10 + $0x8] sm:$0xff] }
 0x31d   : > { %1514 = vmatprep.subr.mxu1 %v1070_v22 }
 0x31e   : > { %v854_v27 = vrot.slane %v850_v25, 7  ;;  %v855_v28 = vrot.slane %v851_v26, 7  ;;  %1515 = vmatpush3.msra.mxu1 %v1070_v22 }
 0x31f   : > { %1516 = vmatprep.subr.mxu1 %v1069_v23 }
 0x320   : > { %v856_v29 = vsel %vm497_vm0, %v854_v27, %v855_v28  ;;  %v861_v30 = vsel %vm497_vm0, %v855_v28, 0.0  ;;  %v860_v31 = vsel %vm497_vm0, 0.0, %v854_v27  ;;  %1517 = vmatpush3.msra.mxu1 %v1069_v23  ;;  %v1068_v28 = vld [vmem:[%s2061_s10] sm:$0xff] }
 0x321   : > { %v865_v32 = vrot.slane %v856_v29, 1  ;;  %v867_v33 = vrot.slane %v861_v30, 1  ;;  %v864_v34 = vrot.slane %v860_v31, 1  ;;  %v876_v35 = vrot.slane %v856_v29, 2  ;;  %1518 = vmatprep.subr.mxu1 %v1068_v28 }
 0x322   : > { %v878_v38 = vrot.slane %v861_v30, 2  ;;  %v875_v39 = vrot.slane %v860_v31, 2  ;;  %1519 = vmatpush3.msra.mxu1 %v1068_v28 }
 0x323   : > { %v868_v36 = vsel %vm508_vm1, %v865_v32, %v867_v33  ;;  %v866_v37 = vsel %vm508_vm1, %v864_v34, %v865_v32 }
 0x324   : > { %871 = vrot.lane.b32.xlu1 %v868_v36, %s1646_s27  ;;  %869 = vrot.lane.b32.xlu0 %v866_v37, %s1646_s27  ;;  %v879_v40 = vsel %vm520_vm2, %v876_v35, %v878_v38  ;;  %v877_v41 = vsel %vm520_vm2, %v875_v39, %v876_v35 }
 0x328   : > { %882 = vrot.lane.b32.xlu1 %v879_v40, %s1647_s29  ;;  %880 = vrot.lane.b32.xlu0 %v877_v41, %s1647_s29  ;;  %s2008_s29 = scalar_lea.hbm %s2066_s15, %s1399_s23 }
 0x396   : > { %v872_v42 = vpop.permute.xlu1 %871  ;;  %v870_v43 = vpop.permute.xlu0 %869 }
 0x397   : > { %v887_v44 = vsel %vm623_vm6, %v856_v29, %v872_v42  ;;  %v886_v45 = vsel %vm623_vm6, %v860_v31, %v870_v43 }
 0x39a   : > { %v883_v46 = vpop.permute.xlu1 %882  ;;  %v881_v47 = vpop.permute.xlu0 %880 }
 0x39b   : > { %v889_v48 = vsel %vm708_vm7, %v887_v44, %v883_v46  ;;  %v888_v49 = vsel %vm708_vm7, %v886_v45, %v881_v47 }
 0x39c   : > { %1505 = vmatprep.mubr.msk.f32.mxu0 %vm723_vm8, %v888_v49 }
 0x39d   : > { %1506 = vmatmul.mubr.msk.f32.vlgmr.msra.gmra.mxu0 %vm723_vm8, %v889_v48 }
 0x45d   : > { %v1507_v53 = vpop.f32.mrf.mxu0 }
 0x45e   : > { %v984_v55 = vsel %vm535_vm4, %v1507_v53, 0.0 }
 0x45f   : > { %v974_v54 = vpop.f32.mrf.mxu0 }
 0x460   : > { %v983_v56 = vsel %vm535_vm4, %v974_v54, 0.0 }
 0x461   : > { %v985_v57 = vadd.f32 %v984_v55, %v983_v56  ;;  %v1203_v55 = vld [vmem:[%s2064_s13] sm:$0xff] }
 0x463   : > { %v986_v58 = vrot.slane %v985_v57, 4 }
 0x465   : > { %v987_v59 = vadd.f32 %v986_v58, %v985_v57 }
 0x467   : > { %v988_v60 = vrot.slane %v987_v59, 2 }
 0x469   : > { %v989_v61 = vadd.f32 %v988_v60, %v987_v59 }
 0x46b   : > { %v990_v62 = vrot.slane %v989_v61, 1 }
 0x46d   : > { %v991_v63 = vadd.f32 %v990_v62, %v989_v61 }
 0x46f   : > { %v992_v0 = vmul.f32 0.0625, %v991_v63 }
 0x471   : > { %v993_v1 = vsub.f32 %v974_v54, %v992_v0  ;;  %v994_v2 = vsub.f32 %v1507_v53, %v992_v0  ;;  %v1204_v54 = vld [vmem:[%s2064_s13 + $0x8] sm:$0xff] }
 0x472   : > { %1523 = vmatprep.subr.mxu0 %v1204_v54 }
 0x473   : > { %v995_v4 = vmul.f32 %v993_v1, %v993_v1  ;;  %v996_v5 = vmul.f32 %v994_v2, %v994_v2  ;;  %1524 = vmatpush3.msra.mxu0 %v1204_v54 }
 0x474   : > { %1525 = vmatprep.subr.mxu0 %v1203_v55 }
 0x475   : > { %v997_v6 = vsel %vm535_vm4, %v995_v4, 0.0  ;;  %v998_v7 = vsel %vm535_vm4, %v996_v5, 0.0  ;;  %1526 = vmatpush3.msra.mxu0 %v1203_v55 }
 0x476   : > { %v999_v8 = vadd.f32 %v998_v7, %v997_v6 }
 0x478   : > { %v1000_v9 = vrot.slane %v999_v8, 4 }
 0x47a   : > { %v1001_v10 = vadd.f32 %v1000_v9, %v999_v8 }
 0x47c   : > { %v1002_v11 = vrot.slane %v1001_v10, 2 }
 0x47e   : > { %v1003_v12 = vadd.f32 %v1002_v11, %v1001_v10 }
 0x480   : > { %v1004_v13 = vrot.slane %v1003_v12, 1 }
 0x482   : > { %v1005_v14 = vadd.f32 %v1004_v13, %v1003_v12 }
 0x484   : > { %v1006_v15 = vmul.f32 0.0625, %v1005_v14 }
 0x486   : > { %v1008_v16 = vadd.f32 1e-05, %v1006_v15 }
 0x488   : > { %1578 = vrsqrt.f32 %v1008_v16 }
 0x495   : > { %v1579_v18 = vpop.eup %1578 }
 0x496   : > { %v1010_v19 = vmul.f32 %v1579_v18, %v1007_v17 }
 0x498   : > { %v1015_v20 = vrot.slane %v1010_v19, %v1839_v3 }
 0x49a   : > { %v1017_v24 = vmul.f32 %v1015_v20, %v993_v1  ;;  %v1018_v25 = vmul.f32 %v1015_v20, %v994_v2  ;;  %v1180_v20 = vld [vmem:[%s2062_s11] sm:$0x1] }
 0x49c   : > { %v1026_v26 = vadd.f32 %v1386_v21, %v1017_v24  ;;  %v1027_v27 = vadd.f32 %v1386_v21, %v1018_v25  ;;  %v1389_v24 = vld [vmem:[%s2063_s12] ss:$0 sm:$0xff] }
 0x49e   : > { %v1028_v29 = vmax.f32 %v1026_v26, 0.0  ;;  %v1029_v30 = vmax.f32 %v1027_v27, 0.0 }
 0x4a0   : > { %v1032_v31 = vrot.slane %v1028_v29, 7  ;;  %v1033_v32 = vrot.slane %v1029_v30, 7 }
 0x4a2   : > { %v1034_v33 = vsel %vm497_vm0, %v1032_v31, %v1033_v32  ;;  %v1039_v34 = vsel %vm497_vm0, %v1033_v32, 0.0  ;;  %v1038_v35 = vsel %vm497_vm0, 0.0, %v1032_v31 }
 0x4a3   : > { %v1043_v36 = vrot.slane %v1034_v33, 1  ;;  %v1045_v37 = vrot.slane %v1039_v34, 1  ;;  %v1042_v38 = vrot.slane %v1038_v35, 1  ;;  %v1054_v39 = vrot.slane %v1034_v33, 2 }
 0x4a4   : > { %v1056_v42 = vrot.slane %v1039_v34, 2  ;;  %v1053_v43 = vrot.slane %v1038_v35, 2 }
 0x4a5   : > { %v1046_v40 = vsel %vm508_vm1, %v1043_v36, %v1045_v37  ;;  %v1044_v41 = vsel %vm508_vm1, %v1042_v38, %v1043_v36 }
 0x4a6   : > { %1049 = vrot.lane.b32.xlu1 %v1046_v40, %s1645_s20  ;;  %1047 = vrot.lane.b32.xlu0 %v1044_v41, %s1645_s20  ;;  %v1057_v44 = vsel %vm520_vm2, %v1054_v39, %v1056_v42  ;;  %v1055_v45 = vsel %vm520_vm2, %v1053_v43, %v1054_v39  ;;  %s1588_s20 = scalar_lea.vmem %s1587_s16, 512 }
 0x4aa   : > { %1060 = vrot.lane.b32.xlu1 %v1057_v44, %s1646_s27  ;;  %1058 = vrot.lane.b32.xlu0 %v1055_v45, %s1646_s27  ;;  %s1309_s27 = sshll.u32 %s487_s17, 4  ;;  %s2003_s27 = int_to_ptr.vmem [resolvable:$true] %s1309_s27 }
 0x4ab   : > { %s1582_s30 = scalar_lea.vmem %s2003_s27, 256  ;;  %p1589_p0 = scmp.lt.s32.totalorder %s2003_s27, %s1587_s16 }
 0x4ac   : > { %p1583_p11 = scmp.ne.s32.totalorder %s2003_s27, %s1582_s30  ;;  %p1590_p1 = scmp.lt.s32.totalorder %s1588_s20, %s1582_s30 }
 0x4ae   : > { %p1584_p12 = pnand %p1583_p11, %p1768_p5  ;;  %p1591_p2 = por %p1590_p1, %p1589_p0 }
 0x4b0   : > { %p1585_p13 = pneg %p1584_p12 }
 0x4b2   : > { %p1592_p3 = pnand %p1591_p2, %p1585_p13 }
 0x518   : > { %v1050_v46 = vpop.permute.xlu1 %1049  ;;  %v1048_v47 = vpop.permute.xlu0 %1047 }
 0x519   : > { %v1065_v48 = vsel %vm535_vm4, %v1034_v33, %v1050_v46  ;;  %v1064_v49 = vsel %vm535_vm4, %v1038_v35, %v1048_v47 }
 0x51c   : > { %v1061_v50 = vpop.permute.xlu1 %1060  ;;  %v1059_v51 = vpop.permute.xlu0 %1058 }
 0x51d   : > { %v1067_v52 = vsel %vm623_vm6, %v1065_v48, %v1061_v50  ;;  %v1066_v53 = vsel %vm623_vm6, %v1064_v49, %v1059_v51 }
 0x51e   : > { %1520 = vmatprep.mubr.msk.f32.mxu1 %vm1074_vm9, %v1066_v53 }
 0x51f   : > { %1521 = vmatmul.mubr.msk.f32.vlgmr.msra.gmra.mxu1 %vm1074_vm9, %v1067_v52 }
 0x5df   : > { %v1522_v56 = vpop.f32.mrf.mxu1 }
 0x5e0   : > { %v1157_v58 = vsel %vm535_vm4, %v1522_v56, 0.0 }
 0x5e1   : > { %v1147_v57 = vpop.f32.mrf.mxu1 }
 0x5e2   : > { %v1156_v59 = vsel %vm535_vm4, %v1147_v57, 0.0 }
 0x5e3   : > { %v1158_v60 = vadd.f32 %v1157_v58, %v1156_v59 }
 0x5e5   : > { %v1159_v61 = vrot.slane %v1158_v60, 4 }
 0x5e7   : > { %v1160_v62 = vadd.f32 %v1159_v61, %v1158_v60 }
 0x5e9   : > { %v1161_v63 = vrot.slane %v1160_v62, 2 }
 0x5eb   : > { %v1162_v0 = vadd.f32 %v1161_v63, %v1160_v62 }
 0x5ed   : > { %v1163_v1 = vrot.slane %v1162_v0, 1 }
 0x5ef   : > { %v1164_v2 = vadd.f32 %v1163_v1, %v1162_v0 }
 0x5f1   : > { %v1165_v4 = vmul.f32 0.0625, %v1164_v2 }
 0x5f3   : > { %v1166_v5 = vsub.f32 %v1147_v57, %v1165_v4  ;;  %v1167_v6 = vsub.f32 %v1522_v56, %v1165_v4 }
 0x5f5   : > { %v1168_v7 = vmul.f32 %v1166_v5, %v1166_v5  ;;  %v1169_v8 = vmul.f32 %v1167_v6, %v1167_v6 }
 0x5f7   : > { %v1170_v9 = vsel %vm535_vm4, %v1168_v7, 0.0  ;;  %v1171_v10 = vsel %vm535_vm4, %v1169_v8, 0.0 }
 0x5f8   : > { %v1172_v11 = vadd.f32 %v1171_v10, %v1170_v9 }
 0x5fa   : > { %v1173_v12 = vrot.slane %v1172_v11, 4 }
 0x5fc   : > { %v1174_v13 = vadd.f32 %v1173_v12, %v1172_v11 }
 0x5fe   : > { %v1175_v14 = vrot.slane %v1174_v13, 2 }
 0x600   : > { %v1176_v15 = vadd.f32 %v1175_v14, %v1174_v13 }
 0x602   : > { %v1177_v16 = vrot.slane %v1176_v15, 1 }
 0x604   : > { %v1178_v17 = vadd.f32 %v1177_v16, %v1176_v15 }
 0x606   : > { %v1179_v18 = vmul.f32 0.0625, %v1178_v17 }
 0x608   : > { %v1181_v19 = vadd.f32 1e-05, %v1179_v18 }
 0x60a   : > { %1580 = vrsqrt.f32 %v1181_v19 }
 0x617   : > { %v1581_v21 = vpop.eup %1580 }
 0x618   : > { %v1183_v22 = vmul.f32 %v1581_v21, %v1180_v20 }
 0x61a   : > { %v1188_v23 = vrot.slane %v1183_v22, %v1839_v3  ;;  %v1390_v3 = vld [vmem:[%s2065_s14] ss:$0 sm:$0xff] }
 0x61c   : > { %v1190_v25 = vmul.f32 %v1188_v23, %v1166_v5  ;;  %v1191_v26 = vmul.f32 %v1188_v23, %v1167_v6 }
 0x61e   : > { %v1199_v27 = vadd.f32 %v1389_v24, %v1190_v25  ;;  %v1200_v28 = vadd.f32 %v1389_v24, %v1191_v26 }
 0x620   : > { %v1201_v29 = vmax.f32 %v1199_v27, 0.0  ;;  %v1202_v30 = vmax.f32 %v1200_v28, 0.0 }
 0x622   : > { %1527 = vmatprep.mubr.msk.f32.mxu0 %vm535_vm4, %v1201_v29 }
 0x623   : > { %1528 = vmatmul.mubr.msk.f32.vlgmr.msra.gmra.mxu0 %vm535_vm4, %v1202_v30 }
 0x6e3   : > { %v1529_v31 = vpop.f32.mrf.mxu0 }
 0x6e4   : > { %v1290_v32 = vadd.f32 %v1529_v31, %v1390_v3 }
 0x6e5   : > { %v1284_v33 = vpop.f32.mrf.mxu0 }
 0x6e6   : > { %1294 = vst [vmem:[%s487_s17 + $0x8] sm:$0xff] %v1290_v32  ;;  %v1285_v34 = vadd.f32 %v1390_v3, %v1284_v33 }
 0x6e8   : > { %1293 = vst [vmem:[%s487_s17] sm:$0xff] %v1285_v34 }
 0x6e9   : > { %1595 = shalt.err (!%p1592_p3)
}
 0x6ea   : > { %s1596_s24 = scalar_lea.hbm %s2008_s29, 256  ;;  %s1600_s25 = scalar_lea.hbm %s2066_s15, 1024 }
 0x6eb   : > { %p1597_p4 = scmp.ne.s32.totalorder %s2008_s29, %s1596_s24  ;;  %p1601_p9 = scmp.lt.s32.totalorder %s2008_s29, %s2066_s15 }
 0x6ec   : > { %p1602_p10 = scmp.lt.s32.totalorder %s1600_s25, %s1596_s24 }
 0x6ed   : > { %p1598_p7 = pnand %p1597_p4, %p1768_p5 }
 0x6ee   : > { %p1603_p11 = por %p1602_p10, %p1601_p9 }
 0x6ef   : > { %p1599_p8 = pneg %p1598_p7 }
 0x6f1   : > { %p1604_p12 = pnand %p1603_p11, %p1599_p8 }
 0x6f3   : > { %1607 = shalt.err (!%p1604_p12)
}
 0x6f4   : > { %s1649_s30 = smov 128   ;;  %s2080_s16 = smov 8  }
 0x6f5   : > { %1530 = dma.vmem_to_hbm [thread:$0]  (%p1768_p5), %s2003_s27, 256, %s2008_s29, %s2010_s18, %s1649_s30, %s1649_s30, %s2080_s16  }
 0x6f6 PF: > { %s2081_s20 = sld [smem:[#allocation5_spill]]  ;;  %p1536_p13 = scmp.ge.s32.totalorder %s1642_s21, 2 }
 0x6f8   : > { %p1533_p0 = pnand %p1536_p13, %p1772_p6 }
 0x6fa   : > { %p1534_p1 = pneg %p1533_p0 }
 0x6fc   : > { %s1324_s23 = sand.u32 1, %s2081_s20  }
 0x6fd   : > { %s1325_s24 = scalar_lea.sflag [#allocation3], %s1324_s23 }
 0x6fe   : > { %1625 = dma.done.wait (%p1534_p1), %s1325_s24, 256  }
 0x6ff   : > { %1627 = vsyncadd (%p1534_p1), %s1325_s24, 4294967040  ;;  %s2083_s21 = sld [smem:[#allocation7_spill]]  ;;  %s2086_s18 = smov %s1634_s19 }
 0x700   : > { %s2084_s28 = sld [smem:[#allocation6_spill]] }
 0x701   : > { %s2085_s20 = sld [smem:[#allocation8_spill]] }
 0x705   : > { %p25_p2 = scmp.ge.s32.totalorder %s2083_s21, 6  }
 0x706   : > { %s2087_s19 = smov %s2084_s28 }
 0x707   :  { %27 = sbr.rel (!%p25_p2) target bundleno = 3 (0x3), region = 115 }
 0x70c   :  { %1330 = vsyncpa [#allocation3], 1 }
 0x70d   :  { %1332 = vsyncpa [#allocation3 + $0x1], 1 }

</bundles_post_ra>
